<compile_context>
chip_gen: v7x
topology: tpu7x:2x2x1
jax: 0.10.0
libtpu: 0.0.40
codegen_flags: <defaults>
</compile_context>

<pallas_src>
import math
import functools
from typing import Any, NamedTuple

import jax
import jax.numpy as jnp
from jax.experimental import pallas as pl
from jax.experimental.pallas import tpu as pltpu


def _round_up(x, m):
    return ((x + m - 1) // m) * m


def _cdiv(a, b):
    return -(-a // b)


def _default_vmem_limit():
    # ~75% of physical VMEM, capped; safe fallback if the query is unavailable.
    try:
        cap = pltpu.get_tpu_info().vmem_capacity_bytes
        return min(int(cap * 3 // 4), 112 * 1024 * 1024)
    except Exception:
        return 48 * 1024 * 1024


class TALoRAParams(NamedTuple):
    w_t: Any      # [Din_p, Dout_p]  base weight, pre-transposed, padded, cast
    bias: Any     # [1, Dout_p]      f32
    lora_A: Any   # [Din_p, R_p]
    lora_B: Any   # [R_p, Dout_p]
    alpha: float
    din: int
    dout: int
    tk: int       # K tile the padding was aligned to
    tn: int       # N tile the padding was aligned to


def prepare_ta_lora(weight, bias, lora_A, lora_B, lora_alpha, *,
                    tn=512, tk=1024, compute_dtype=jnp.bfloat16):
    """One-time (init-path) preparation of the TA_LoRA parameters.

    weight:  [Dout, Din]  (torch nn.Linear layout)
    bias:    [Dout]
    lora_A:  [Din, R]
    lora_B:  [R, Dout]

    Does the transpose, cast to the MXU compute dtype and tile-aligned zero
    padding ONCE, so none of it sits on the per-call hot path.
    """
    Dout, Din = weight.shape
    R = lora_A.shape[1]

    tk_eff = min(tk, _round_up(Din, 128))
    tn_eff = min(tn, _round_up(Dout, 128))
    assert tk_eff % 128 == 0 and tn_eff % 128 == 0
    Din_p = _round_up(Din, tk_eff)
    Dout_p = _round_up(Dout, tn_eff)

    cdt = jnp.dtype(compute_dtype)
    r_pack = 8 * (4 // cdt.itemsize)          # sublane pack: 8 f32 / 16 bf16
    R_p = _round_up(R, r_pack)

    w_t = jnp.pad(weight.T.astype(compute_dtype),
                  ((0, Din_p - Din), (0, Dout_p - Dout)))
    bias2d = jnp.pad(bias.reshape(1, Dout).astype(jnp.float32),
                     ((0, 0), (0, Dout_p - Dout)))
    a_p = jnp.pad(lora_A.astype(compute_dtype),
                  ((0, Din_p - Din), (0, R_p - R)))
    b_p = jnp.pad(lora_B.astype(compute_dtype),
                  ((0, R_p - R), (0, Dout_p - Dout)))

    return TALoRAParams(w_t=w_t, bias=bias2d, lora_A=a_p, lora_B=b_p,
                        alpha=float(lora_alpha), din=Din, dout=Dout,
                        tk=tk_eff, tn=tn_eff)


def _ta_lora_kernel(x_ref, wt_ref, bias_ref, a_ref, b_ref, o_ref,
                    acc_ref, xa_ref, *, alpha, tk, hoist_xa):
    # x_ref:    (tm, tk)      input row tile, K slice (compute dtype)
    # wt_ref:   (tk, tn)      base weight (pre-transposed), K x N tile
    # bias_ref: (1, tn)       base bias N tile (f32)
    # a_ref:    (Din_p, R_p)  full lora_A, VMEM-resident (constant index_map)
    # b_ref:    (R_p, tn)     lora_B N tile
    # o_ref:    (tm, tn)      output tile
    # acc_ref:  (tm, tn)      f32 accumulator for x @ W^T (carried over k)
    # xa_ref:   (tm, R_p)     f32 accumulator for x @ lora_A
    j = pl.program_id(1)
    k = pl.program_id(2)
    nk = pl.num_programs(2)

    @pl.when(k == 0)
    def _init_acc():
        acc_ref[...] = jnp.zeros_like(acc_ref)

    x = x_ref[...]

    # Base path partial product on the MXU, f32 accumulation.
    acc_ref[...] += jnp.dot(x, wt_ref[...], preferred_element_type=jnp.float32)

    def _lora_down():
        @pl.when(k == 0)
        def _init_xa():
            xa_ref[...] = jnp.zeros_like(xa_ref)
        # A is fully VMEM resident; slice the K chunk for this k step.
        start = pl.multiple_of(k * tk, tk)
        a_blk = a_ref[pl.ds(start, tk), :]
        xa_ref[...] += jnp.dot(x, a_blk, preferred_element_type=jnp.float32)

    if hoist_xa:
        # NOTE(correctness): the hoist reuses xa_ref (filled during the j==0
        # sweep) for all j > 0, so the j axis MUST stay sequential
        # ("arbitrary") with k innermost.  The wrapper enforces this.
        pl.when(j == 0)(_lora_down)
    else:
        # Recomputed for every j -> j may be marked "parallel" (v7x megacore).
        _lora_down()

    # Finalize: bias + alpha * (xa @ B), cast, store (lane-dense output tile).
    @pl.when(k == nk - 1)
    def _finalize():
        # Up-projection in the compute dtype (no-op cast when it's f32),
        # f32 accumulation; cost is negligible vs. the base GEMM.
        xa = xa_ref[...].astype(b_ref.dtype)
        lora = jnp.dot(xa, b_ref[...], preferred_element_type=jnp.float32)
        out = acc_ref[...] + bias_ref[...] + alpha * lora
        o_ref[...] = out.astype(o_ref.dtype)


def ta_lora_forward(x, params: TALoRAParams, *, tm=512, out_dtype=None,
                    vmem_limit_bytes=None, min_row_tiles=1):
    """TA_LoRA forward:  y = x @ W^T + bias + alpha * (x @ A @ B).

    x:      [B, S, Din]
    params: output of prepare_ta_lora (weights padded/cast once at init).
    tm:            row-tile size (sweep per generation; 512 default).
    min_row_tiles: set >=2 on v7x to guarantee both TensorCores get row tiles
                   when M is large enough.
    """
    B, S, Din = x.shape
    assert Din == params.din
    Din_p, Dout_p = params.w_t.shape
    R_p = params.lora_A.shape[1]
    tk_eff, tn_eff = params.tk, params.tn
    out_dtype = x.dtype if out_dtype is None else out_dtype

    M = B * S
    # Balanced row tiling: avoids padding M=tm+eps up to 2*tm.
    n_row_tiles = max(int(min_row_tiles), _cdiv(M, tm))
    n_row_tiles = min(n_row_tiles, _cdiv(M, 8))
    tm_eff = _round_up(_cdiv(M, n_row_tiles), 8)
    M_p = n_row_tiles * tm_eff

    ni, nj, nk = n_row_tiles, Dout_p // tn_eff, Din_p // tk_eff

    # Hoist x@A only when the i axis already provides parallelism (or there is
    # a single Dout tile anyway); otherwise recompute per j so j can be
    # parallel and both v7x TensorCores get work.
    hoist_xa = (ni >= 2) or (nj == 1)

    # Per-call hot path: only x is cast / padded (and only when ragged).
    x2d = x.reshape(M, Din).astype(params.w_t.dtype)
    if (M_p != M) or (Din_p != Din):
        x2d = jnp.pad(x2d, ((0, M_p - M), (0, Din_p - Din)))

    if vmem_limit_bytes is None:
        vmem_limit_bytes = _default_vmem_limit()

    flops = (2 * M_p * Din_p * Dout_p          # base GEMM
             + 2 * M_p * Din_p * R_p           # x @ A
             + 2 * M_p * R_p * Dout_p)         # (xA) @ B
    bytes_accessed = (
        x2d.size * x2d.dtype.itemsize
        + params.w_t.size * params.w_t.dtype.itemsize
        + params.bias.size * 4
        + params.lora_A.size * params.lora_A.dtype.itemsize
        + params.lora_B.size * params.lora_B.dtype.itemsize
        + M_p * Dout_p * jnp.dtype(out_dtype).itemsize)

    kernel = functools.partial(_ta_lora_kernel, alpha=params.alpha,
                               tk=tk_eff, hoist_xa=hoist_xa)

    out2d = pl.pallas_call(
        kernel,
        out_shape=jax.ShapeDtypeStruct((M_p, Dout_p), out_dtype),
        grid_spec=pltpu.PrefetchScalarGridSpec(
            num_scalar_prefetch=0,
            grid=(ni, nj, nk),
            in_specs=[
                pl.BlockSpec((tm_eff, tk_eff), lambda i, j, k: (i, k)),   # x
                pl.BlockSpec((tk_eff, tn_eff), lambda i, j, k: (k, j)),   # W^T
                pl.BlockSpec((1, tn_eff), lambda i, j, k: (0, j)),        # bias
                pl.BlockSpec((Din_p, R_p), lambda i, j, k: (0, 0)),       # A (resident)
                pl.BlockSpec((R_p, tn_eff), lambda i, j, k: (0, j)),      # B
            ],
            out_specs=pl.BlockSpec((tm_eff, tn_eff), lambda i, j, k: (i, j)),
            scratch_shapes=[
                pltpu.VMEM((tm_eff, tn_eff), jnp.float32),    # base acc
                pltpu.VMEM((tm_eff, R_p), jnp.float32),       # x @ A acc
            ],
        ),
        compiler_params=pltpu.CompilerParams(
            # i independent -> parallel.  j parallel only when the x@A hoist
            # is disabled; otherwise it must stay sequential.  k carries the
            # accumulator -> arbitrary.
            dimension_semantics=("parallel",
                                 "arbitrary" if hoist_xa else "parallel",
                                 "arbitrary"),
            vmem_limit_bytes=int(vmem_limit_bytes),
        ),
        cost_estimate=pl.CostEstimate(
            flops=flops, transcendentals=0, bytes_accessed=bytes_accessed),
    )(x2d, params.w_t, params.bias, params.lora_A, params.lora_B)

    return out2d[:M, :params.dout].reshape(B, S, params.dout)


if __name__ == "__main__":
    # Small shapes implied by the forward: x [batch, seq, in_features].
    batch, seq, in_features, out_features, rank = 2, 8, 256, 384, 4
    lora_alpha = 2.0

    key = jax.random.PRNGKey(0)
    k_x, k_w, k_b, k_a, k_bb = jax.random.split(key, 5)

    x = jax.random.normal(k_x, (batch, seq, in_features), dtype=jnp.float32)

    # nn.Linear default init (uniform +-1/sqrt(fan_in)), deterministic.
    bound_w = 1.0 / math.sqrt(in_features)
    weight = jax.random.uniform(k_w, (out_features, in_features),
                                minval=-bound_w, maxval=bound_w,
                                dtype=jnp.float32)
    bias = jax.random.uniform(k_b, (out_features,),
                              minval=-bound_w, maxval=bound_w,
                              dtype=jnp.float32)

    # lora_A: kaiming_uniform_(a=sqrt(5)); lora_B is zeros in __init__ but
    # uses small random values here so the LoRA path is exercised numerically.
    bound_a = math.sqrt(6.0 / ((1.0 + 5.0) * rank))
    lora_A = jax.random.uniform(k_a, (in_features, rank),
                                minval=-bound_a, maxval=bound_a,
                                dtype=jnp.float32)
    lora_B = 0.05 * jax.random.normal(k_bb, (rank, out_features),
                                      dtype=jnp.float32)

    # Pure-JAX reference (f32).
    ref = (x @ weight.T + bias) + (x @ lora_A @ lora_B) * lora_alpha

    # 1) Default config: bf16 MXU operands, f32 accumulation, large tiles.
    params_bf16 = prepare_ta_lora(weight, bias, lora_A, lora_B, lora_alpha)
    y = jax.block_until_ready(ta_lora_forward(x, params_bf16))
    assert y.shape == (batch, seq, out_features)
    assert jnp.allclose(y, ref, atol=1e-1, rtol=5e-2)

    # 2) f32 operands, small tiles -> multi-step grid (2 row tiles, 3 N tiles,
    #    2 K tiles) exercising accumulator init/finalize + hoisted x@A reuse.
    params_f32 = prepare_ta_lora(weight, bias, lora_A, lora_B, lora_alpha,
                                 tn=128, tk=128, compute_dtype=jnp.float32)
    y2 = jax.block_until_ready(ta_lora_forward(x, params_f32, tm=8))
    assert jnp.allclose(y2, ref, atol=1e-4, rtol=1e-4)

    # 3) Single row tile -> hoist is dropped, j axis goes "parallel"
    #    (v7x both-TensorCores path).
    y3 = jax.block_until_ready(ta_lora_forward(x, params_f32, tm=512))
    assert jnp.allclose(y3, ref, atol=1e-4, rtol=1e-4)

    # 4) Ragged M (not a multiple of 8) with forced 2 balanced row tiles.
    x_odd = x[:, :5, :]                          # M = 10
    ref_odd = (x_odd @ weight.T + bias) + (x_odd @ lora_A @ lora_B) * lora_alpha
    y4 = jax.block_until_ready(
        ta_lora_forward(x_odd, params_f32, tm=512, min_row_tiles=2))
    assert jnp.allclose(y4, ref_odd, atol=1e-4, rtol=1e-4)

    print("KERNEL_OK")
</pallas_src>

<mosaic_0001>
module attributes {stable_mosaic.version = 11 : i64} {
  func.func @_ta_lora_kernel(%arg0: i32, %arg1: i32, %arg2: i32, %arg3: memref<16x256xbf16, #tpu.memory_space<vmem>>, %arg4: memref<256x384xbf16, #tpu.memory_space<vmem>>, %arg5: memref<1x384xf32, #tpu.memory_space<vmem>>, %arg6: memref<256x16xbf16, #tpu.memory_space<vmem>>, %arg7: memref<16x384xbf16, #tpu.memory_space<vmem>>, %arg8: memref<16x384xf32, #tpu.memory_space<vmem>>, %arg9: memref<16x384xf32, #tpu.memory_space<vmem>>, %arg10: memref<16x16xf32, #tpu.memory_space<vmem>>) attributes {dimension_semantics = [#tpu.dimension_semantics<parallel>, #tpu.dimension_semantics<arbitrary>, #tpu.dimension_semantics<arbitrary>], iteration_bounds = array<i64: 1, 1, 1>, scalar_prefetch = 0 : i64, scratch_operands = 2 : i64, tpu.core_type = #tpu.core_type<tc>, window_params = [{transform_indices = @transform_0, window_bounds = array<i64: 16, 256>}, {transform_indices = @transform_1, window_bounds = array<i64: 256, 384>}, {transform_indices = @transform_2, window_bounds = array<i64: 1, 384>}, {pipeline_mode = #tpu.pipeline_mode<synchronous>, transform_indices = @transform_3, window_bounds = array<i64: 256, 16>}, {transform_indices = @transform_4, window_bounds = array<i64: 16, 384>}, {transform_indices = @transform_5, window_bounds = array<i64: 16, 384>}]} {
    %c0_i32 = arith.constant 0 : i32
    %0 = arith.cmpi eq, %arg2, %c0_i32 : i32
    %1 = arith.extui %0 : i1 to i32
    %c0_i32_0 = arith.constant 0 : i32
    %2 = arith.cmpi ne, %1, %c0_i32_0 : i32
    scf.if %2 {
      %cst_12 = arith.constant 0.000000e+00 : f32
      %15 = vector.broadcast %cst_12 : f32 to vector<16x384xf32>
      %c0_13 = arith.constant 0 : index
      %c0_14 = arith.constant 0 : index
      %16 = vector.load %arg9[%c0_13, %c0_14] : memref<16x384xf32, #tpu.memory_space<vmem>>, vector<16x384xf32>
      tpu.vector_store %arg9[%c0_13, %c0_14], %15 {strides = array<i32>} : memref<16x384xf32, #tpu.memory_space<vmem>>, vector<16x384xf32>,
    } else {
    }
    %c0 = arith.constant 0 : index
    %c0_1 = arith.constant 0 : index
    %3 = vector.load %arg3[%c0, %c0_1] : memref<16x256xbf16, #tpu.memory_space<vmem>>, vector<16x256xbf16>
    %c0_2 = arith.constant 0 : index
    %c0_3 = arith.constant 0 : index
    %4 = vector.load %arg9[%c0_2, %c0_3] : memref<16x384xf32, #tpu.memory_space<vmem>>, vector<16x384xf32>
    %c0_4 = arith.constant 0 : index
    %c0_5 = arith.constant 0 : index
    %5 = vector.load %arg4[%c0_4, %c0_5] : memref<256x384xbf16, #tpu.memory_space<vmem>>, vector<256x384xbf16>
    %cst = arith.constant dense<0.000000e+00> : vector<16x384xf32>
    %6 = tpu.matmul %3, %5, %cst {dimension_numbers = #tpu.dot_dimension_numbers<[1], [0], [0], [1], [0, 0, 1, 1], [], []>} : vector<16x256xbf16>, vector<256x384xbf16>, vector<16x384xf32> -> vector<16x384xf32>
    %7 = arith.addf %4, %6 : vector<16x384xf32>
    %c0_6 = arith.constant 0 : index
    %c0_7 = arith.constant 0 : index
    %8 = vector.load %arg9[%c0_6, %c0_7] : memref<16x384xf32, #tpu.memory_space<vmem>>, vector<16x384xf32>
    tpu.vector_store %arg9[%c0_6, %c0_7], %7 {strides = array<i32>} : memref<16x384xf32, #tpu.memory_space<vmem>>, vector<16x384xf32>,
    %c0_i32_8 = arith.constant 0 : i32
    %9 = arith.cmpi eq, %arg1, %c0_i32_8 : i32
    %10 = arith.extui %9 : i1 to i32
    %c0_i32_9 = arith.constant 0 : i32
    %11 = arith.cmpi ne, %10, %c0_i32_9 : i32
    scf.if %11 {
      %c0_i32_12 = arith.constant 0 : i32
      %15 = arith.cmpi eq, %arg2, %c0_i32_12 : i32
      %16 = arith.extui %15 : i1 to i32
      %c0_i32_13 = arith.constant 0 : i32
      %17 = arith.cmpi ne, %16, %c0_i32_13 : i32
      scf.if %17 {
        %cst_20 = arith.constant 0.000000e+00 : f32
        %26 = vector.broadcast %cst_20 : f32 to vector<16x16xf32>
        %c0_21 = arith.constant 0 : index
        %c0_22 = arith.constant 0 : index
        %27 = vector.load %arg10[%c0_21, %c0_22] : memref<16x16xf32, #tpu.memory_space<vmem>>, vector<16x16xf32>
        tpu.vector_store %arg10[%c0_21, %c0_22], %26 {strides = array<i32>} : memref<16x16xf32, #tpu.memory_space<vmem>>, vector<16x16xf32>,
      } else {
      }
      %c256_i32 = arith.constant 256 : i32
      %18 = arith.muli %arg2, %c256_i32 : i32
      %19 = tpu.assume_multiple %18, 256 : i32
      %20 = arith.index_cast %19 : i32 to index
      %c0_14 = arith.constant 0 : index
      %21 = vector.load %arg6[%20, %c0_14] : memref<256x16xbf16, #tpu.memory_space<vmem>>, vector<256x16xbf16>
      %c0_15 = arith.constant 0 : index
      %c0_16 = arith.constant 0 : index
      %22 = vector.load %arg10[%c0_15, %c0_16] : memref<16x16xf32, #tpu.memory_space<vmem>>, vector<16x16xf32>
      %cst_17 = arith.constant dense<0.000000e+00> : vector<16x16xf32>
      %23 = tpu.matmul %3, %21, %cst_17 {dimension_numbers = #tpu.dot_dimension_numbers<[1], [0], [0], [1], [0, 0, 1, 1], [], []>} : vector<16x256xbf16>, vector<256x16xbf16>, vector<16x16xf32> -> vector<16x16xf32>
      %24 = arith.addf %22, %23 : vector<16x16xf32>
      %c0_18 = arith.constant 0 : index
      %c0_19 = arith.constant 0 : index
      %25 = vector.load %arg10[%c0_18, %c0_19] : memref<16x16xf32, #tpu.memory_space<vmem>>, vector<16x16xf32>
      tpu.vector_store %arg10[%c0_18, %c0_19], %24 {strides = array<i32>} : memref<16x16xf32, #tpu.memory_space<vmem>>, vector<16x16xf32>,
    } else {
    }
    %c0_i32_10 = arith.constant 0 : i32
    %12 = arith.cmpi eq, %arg2, %c0_i32_10 : i32
    %13 = arith.extui %12 : i1 to i32
    %c0_i32_11 = arith.constant 0 : i32
    %14 = arith.cmpi ne, %13, %c0_i32_11 : i32
    scf.if %14 {
      %c0_12 = arith.constant 0 : index
      %c0_13 = arith.constant 0 : index
      %15 = vector.load %arg10[%c0_12, %c0_13] : memref<16x16xf32, #tpu.memory_space<vmem>>, vector<16x16xf32>
      %16 = arith.truncf %15 : vector<16x16xf32> to vector<16x16xbf16>
      %c0_14 = arith.constant 0 : index
      %c0_15 = arith.constant 0 : index
      %17 = vector.load %arg7[%c0_14, %c0_15] : memref<16x384xbf16, #tpu.memory_space<vmem>>, vector<16x384xbf16>
      %cst_16 = arith.constant dense<0.000000e+00> : vector<16x384xf32>
      %18 = tpu.matmul %16, %17, %cst_16 {dimension_numbers = #tpu.dot_dimension_numbers<[1], [0], [0], [1], [0, 0, 1, 1], [], []>} : vector<16x16xbf16>, vector<16x384xbf16>, vector<16x384xf32> -> vector<16x384xf32>
      %c0_17 = arith.constant 0 : index
      %c0_18 = arith.constant 0 : index
      %19 = vector.load %arg9[%c0_17, %c0_18] : memref<16x384xf32, #tpu.memory_space<vmem>>, vector<16x384xf32>
      %c0_19 = arith.constant 0 : index
      %c0_20 = arith.constant 0 : index
      %20 = vector.load %arg5[%c0_19, %c0_20] : memref<1x384xf32, #tpu.memory_space<vmem>>, vector<1x384xf32>
      %21 = vector.broadcast %20 : vector<1x384xf32> to vector<16x384xf32>
      %22 = arith.addf %19, %21 : vector<16x384xf32>
      %cst_21 = arith.constant 2.000000e+00 : f32
      %23 = vector.broadcast %cst_21 : f32 to vector<16x384xf32>
      %24 = arith.mulf %23, %18 : vector<16x384xf32>
      %25 = arith.addf %22, %24 : vector<16x384xf32>
      %c0_22 = arith.constant 0 : index
      %c0_23 = arith.constant 0 : index
      %26 = vector.load %arg8[%c0_22, %c0_23] : memref<16x384xf32, #tpu.memory_space<vmem>>, vector<16x384xf32>
      tpu.vector_store %arg8[%c0_22, %c0_23], %25 {strides = array<i32>} : memref<16x384xf32, #tpu.memory_space<vmem>>, vector<16x384xf32>,
    } else {
    }
    return
  }
  func.func @transform_0(%arg0: i32, %arg1: i32, %arg2: i32) -> (i32, i32) {
    %c0_i32 = arith.constant 0 : i32
    return %arg0, %arg2 : i32, i32
  }
  func.func @transform_1(%arg0: i32, %arg1: i32, %arg2: i32) -> (i32, i32) {
    %c0_i32 = arith.constant 0 : i32
    return %arg2, %arg1 : i32, i32
  }
  func.func @transform_2(%arg0: i32, %arg1: i32, %arg2: i32) -> (i32, i32) {
    %c0_i32 = arith.constant 0 : i32
    %c0_i32_0 = arith.constant 0 : i32
    return %c0_i32, %arg1 : i32, i32
  }
  func.func @transform_3(%arg0: i32, %arg1: i32, %arg2: i32) -> (i32, i32) {
    %c0_i32 = arith.constant 0 : i32
    %c0_i32_0 = arith.constant 0 : i32
    %c0_i32_1 = arith.constant 0 : i32
    return %c0_i32, %c0_i32_0 : i32, i32
  }
  func.func @transform_4(%arg0: i32, %arg1: i32, %arg2: i32) -> (i32, i32) {
    %c0_i32 = arith.constant 0 : i32
    %c0_i32_0 = arith.constant 0 : i32
    return %c0_i32, %arg1 : i32, i32
  }
  func.func @transform_5(%arg0: i32, %arg1: i32, %arg2: i32) -> (i32, i32) {
    %c0_i32 = arith.constant 0 : i32
    return %arg0, %arg1 : i32, i32
  }
}

</mosaic_0001>

<bundles_post_ra>
// kernel: tpu_custom_call.1
= control target key start
LH: loop header
LB: loop body
LE: loop exit
PB: predicated region body
PF: predicated region fallthrough
CT: control target
= control target key end

     0   :  { %10 = vsyncpa [#allocation5], 0  ;;  %s1257_s0 = inlined_call_operand.vmem [shape: bf16[16,256], index: 0, kind: input, shape index: {}]   ;;  %s1258_s1 = inlined_call_operand.hbm [shape: bf16[256,384], index: 1, kind: input, shape index: {}]   ;;  %s1259_s2 = inlined_call_operand.vmem [shape: f32[1,384], index: 2, kind: input, shape index: {}]   ;;  %s1260_s3 = inlined_call_operand.vmem [shape: bf16[256,16], index: 3, kind: input, shape index: {}]   ;;  %s1261_s4 = inlined_call_operand.vmem [shape: bf16[16,384], index: 4, kind: input, shape index: {}]   ;;  %s1262_s5 = inlined_call_operand.hbm [shape: f32[16,384], index: 5, kind: output, shape index: {}]  }
   0x1   :  { %11 = vsyncpa [#allocation6], 0  ;;  %s1117_s18 = smov [#allocation4]   ;;  %s1069_s22 = scalar_lea.hbm %s1258_s1, 6144 }
   0x2   :  { %s19_s19 = sshll.u32 %s1117_s18, 4  ;;  %p1070_p0 = scmp.ne.s32.totalorder %s1258_s1, %s1069_s22  ;;  %s20_s19 = int_to_ptr.vmem [resolvable:$true] %s19_s19 }
   0x3   :  { %p1073_p1 = scmp.lt.u32.totalorder %s1069_s22, %s1258_s1 }
   0x5   :  { %p1075_p2 = pnand %p1073_p1, %p1070_p0 }
   0x7   :  { %1078 = shalt.err (!%p1075_p2)
}
   0x8   :  { %s1079_s27 = scalar_lea.vmem %s20_s19, 6144  ;;  %p1084_p4 = scmp.lt.s32.totalorder %s20_s19, %s20_s19 }
   0x9   :  { %p1080_p3 = scmp.ne.s32.totalorder %s20_s19, %s1079_s27  ;;  %p1085_p5 = scmp.lt.s32.totalorder %s1079_s27, %s1079_s27 }
   0xb   :  { %p1086_p6 = por %p1085_p5, %p1084_p4 }
   0xd   :  { %p1087_p7 = pnand %p1086_p6, %p1080_p3 }
   0xf   :  { %1090 = shalt.err (!%p1087_p7)
}
  0x10   :  { %s1118_s28 = smov 192   ;;  %s1119_s29 = smov 12  }
  0x11   :  { %25 = dma.hbm_to_vmem [thread:$0]  %s1258_s1, 6144, %s20_s19, [#allocation5], %s1118_s28, %s1118_s28, %s1119_s29  }
  0x12   :  { %1113 = dma.done.wait [#allocation5], 6144  }
  0x13   :  { %1114 = vsyncadd [#allocation5], 4294961152  ;;  %v983_v0 = vld [vmem:[#allocation4 + $0xc8] ss:$12 sps:$4 sm:$0xff]   ;;  %v985_v2 = vld [vmem:[#allocation4 + $0xe0] ss:$12 sps:$4 sm:$0xff]  }
  0x14   :  { %v984_v1 = vld [vmem:[#allocation4 + $0x8] ss:$12 sps:$4 sm:$0xff]   ;;  %922 = vmatprep.subr.bf16.mxu1 %v983_v0  ;;  %v986_v3 = vld [vmem:[#allocation4 + $0x20] ss:$12 sps:$4 sm:$0xff]   ;;  %v987_v4 = vld [vmem:[#allocation4 + $0xf8] ss:$12 sps:$4 sm:$0xff]  }
  0x15   :  { %923 = vmatpush3.bf16.msra.mxu1 %v984_v1  ;;  %v988_v5 = vld [vmem:[#allocation4 + $0x38] ss:$12 sps:$4 sm:$0xff]   ;;  %v989_v6 = vld [vmem:[#allocation4 + $0x110] ss:$12 sps:$4 sm:$0xff]   ;;  %v991_v8 = vld [vmem:[#allocation4 + $0x128] ss:$12 sps:$4 sm:$0xff]  }
  0x16   :  { %924 = vmatprep.subr.bf16.mxu1 %v985_v2  ;;  %v990_v7 = vld [vmem:[#allocation4 + $0x50] ss:$12 sps:$4 sm:$0xff]   ;;  %v992_v9 = vld [vmem:[#allocation4 + $0x68] ss:$12 sps:$4 sm:$0xff]   ;;  %v993_v10 = vld [vmem:[#allocation4 + $0x140] ss:$12 sps:$4 sm:$0xff]  }
  0x17   :  { %v999_v11 = vld [vmem:[%s1257_s0 + $0x4] ss:$8 sps:$4 sm:$0xff]   ;;  %v994_v12 = vld [vmem:[#allocation4 + $0x80] ss:$12 sps:$4 sm:$0xff]   ;;  %v995_v13 = vld [vmem:[#allocation4 + $0x158] ss:$12 sps:$4 sm:$0xff]  }
  0x18   :  { %459 = vmatprep.mubr.bf16.mxu1 %v999_v11  ;;  %416 = vmatprep.mubr.bf16.mxu0 %v999_v11  ;;  %v996_v14 = vld [vmem:[#allocation4 + $0x98] ss:$12 sps:$4 sm:$0xff]   ;;  %v997_v15 = vld [vmem:[#allocation4 + $0x170] ss:$12 sps:$4 sm:$0xff]   ;;  %v1020_v22 = vld [vmem:[#allocation4] ss:$12 sps:$4 sm:$0xff]  }
  0x19   :  { %925 = vmatpush3.bf16.msra.mxu1 %v986_v3  ;;  %v998_v16 = vld [vmem:[#allocation4 + $0xb0] ss:$12 sps:$4 sm:$0xff]   ;;  %v1006_v25 = vld [vmem:[%s1260_s3 + $0x50] sm:$0xff]   ;;  %v1008_v29 = vld [vmem:[%s1260_s3 + $0x58] sm:$0xff]   ;;  %vm487_vm0 = vcmask 130048   ;;  %v1120_v0 = vmov 0.0  }
  0x1a   :  { %926 = vmatprep.subr.bf16.mxu1 %v987_v4  ;;  %v1002_v17 = vld [vmem:[%s1260_s3 + $0x40] sm:$0xff]   ;;  %v1004_v20 = vld [vmem:[%s1260_s3 + $0x48] sm:$0xff]   ;;  %v1007_v28 = vld [vmem:[%s1260_s3 + $0x10] sm:$0xff]   ;;  %488 = vst.msk [vmem:[#allocation3] sm:$0xff] %vm487_vm0, %v1120_v0  ;;  %vm1122_vm1 = vmmov 0   ;;  %s1123_s20 = smov [#allocation7]  }
  0x1b   :  { %v1177_v18 = vld [vmem:[%s1257_s0] ss:$8 sps:$4 sm:$0xff]   ;;  %v1021_v24 = vld [vmem:[#allocation4 + $0x1c] ss:$12 sps:$4 sm:$0xff]   ;;  %v1024_v27 = vld [vmem:[#allocation4 + $0x34] ss:$12 sps:$4 sm:$0xff]  }
  0x1c   :  { %v1003_v19 = vld [vmem:[%s1260_s3] sm:$0xff]   ;;  %v1005_v23 = vld [vmem:[%s1260_s3 + $0x8] sm:$0xff]   ;;  %v1009_v30 = vld [vmem:[%s1260_s3 + $0x18] sm:$0xff]   ;;  %489 = vst.msk [vmem:[#allocation3 + $0x8] sm:$0xff] %vm487_vm0, %v1120_v0 }
  0x1d   :  { %927 = vmatpush3.bf16.msra.mxu1 %v988_v5  ;;  %v1018_v21 = vld [vmem:[#allocation4 + $0x4] ss:$12 sps:$4 sm:$0xff]   ;;  %v1027_v33 = vld [vmem:[#allocation4 + $0x4c] ss:$12 sps:$4 sm:$0xff]   ;;  %v1029_v34 = vld [vmem:[#allocation4 + $0x48] ss:$12 sps:$4 sm:$0xff]  }
  0x1e   :  { %928 = vmatprep.subr.bf16.mxu1 %v989_v6  ;;  %384 = vmatprep.subr.bf16.mxu0 %v1018_v21  ;;  %v1023_v26 = vld [vmem:[#allocation4 + $0x18] ss:$12 sps:$4 sm:$0xff]   ;;  %v1026_v31 = vld [vmem:[#allocation4 + $0x30] ss:$12 sps:$4 sm:$0xff]   ;;  %v1032_v38 = vld [vmem:[#allocation4 + $0x60] ss:$12 sps:$4 sm:$0xff]  }
  0x1f   :  { %385 = vmatpush1.bf16.msra.mxu0 %v1020_v22  ;;  %v1010_v32 = vld [vmem:[%s1260_s3 + $0x60] sm:$0xff]   ;;  %v1012_v37 = vld [vmem:[%s1260_s3 + $0x68] sm:$0xff]   ;;  %v1014_v41 = vld [vmem:[%s1260_s3 + $0x70] sm:$0xff]  }
  0x20   :  { %386 = vmatprep.subr.bf16.mxu0 %v1021_v24  ;;  %v1030_v35 = vld [vmem:[#allocation4 + $0x64] ss:$12 sps:$4 sm:$0xff]   ;;  %v1033_v39 = vld [vmem:[#allocation4 + $0x7c] ss:$12 sps:$4 sm:$0xff]   ;;  %v1036_v43 = vld [vmem:[#allocation4 + $0x94] ss:$12 sps:$4 sm:$0xff]  }
  0x21   :  { %929 = vmatpush3.bf16.msra.mxu1 %v990_v7  ;;  %v1011_v36 = vld [vmem:[%s1260_s3 + $0x20] sm:$0xff]   ;;  %v1013_v40 = vld [vmem:[%s1260_s3 + $0x28] sm:$0xff]   ;;  %v1015_v44 = vld [vmem:[%s1260_s3 + $0x30] sm:$0xff]  }
  0x22   :  { %930 = vmatprep.subr.bf16.mxu1 %v991_v8  ;;  %v1035_v42 = vld [vmem:[#allocation4 + $0x78] ss:$12 sps:$4 sm:$0xff]   ;;  %v1016_v45 = vld [vmem:[%s1260_s3 + $0x78] sm:$0xff]   ;;  %v1038_v46 = vld [vmem:[#allocation4 + $0x90] ss:$12 sps:$4 sm:$0xff]   ;;  %v1121_v8 = vmov 0  }
  0x23   :  { %387 = vmatpush1.bf16.msra.mxu0 %v1023_v26  ;;  %v1017_v47 = vld [vmem:[%s1260_s3 + $0x38] sm:$0xff]   ;;  %v1042_v50 = vld [vmem:[#allocation4 + $0xc4] ss:$12 sps:$4 sm:$0xff]   ;;  %v1048_v54 = vld [vmem:[#allocation4 + $0xf4] ss:$12 sps:$4 sm:$0xff]  }
  0x24   :  { %388 = vmatprep.subr.bf16.mxu0 %v1024_v27  ;;  %v1039_v48 = vld [vmem:[#allocation4 + $0xac] ss:$12 sps:$4 sm:$0xff]   ;;  %v1041_v49 = vld [vmem:[#allocation4 + $0xa8] ss:$12 sps:$4 sm:$0xff]   ;;  %v1050_v55 = vld [vmem:[#allocation4 + $0xf0] ss:$12 sps:$4 sm:$0xff]  }
  0x25   :  { %931 = vmatpush3.bf16.msra.mxu1 %v992_v9  ;;  %v1044_v51 = vld [vmem:[#allocation4 + $0xc0] ss:$12 sps:$4 sm:$0xff]   ;;  %v1045_v52 = vld [vmem:[#allocation4 + $0xdc] ss:$12 sps:$4 sm:$0xff]   ;;  %v1047_v53 = vld [vmem:[#allocation4 + $0xd8] ss:$12 sps:$4 sm:$0xff]  }
  0x26   :  { %932 = vmatprep.subr.bf16.mxu1 %v993_v10  ;;  %v1051_v56 = vld [vmem:[#allocation4 + $0x10c] ss:$12 sps:$4 sm:$0xff]   ;;  %v1053_v57 = vld [vmem:[#allocation4 + $0x108] ss:$12 sps:$4 sm:$0xff]   ;;  %v1054_v58 = vld [vmem:[#allocation4 + $0x124] ss:$12 sps:$4 sm:$0xff]  }
  0x27   :  { %389 = vmatpush1.bf16.msra.mxu0 %v1026_v31  ;;  %v1056_v59 = vld [vmem:[#allocation4 + $0x120] ss:$12 sps:$4 sm:$0xff]   ;;  %v1057_v60 = vld [vmem:[#allocation4 + $0x13c] ss:$12 sps:$4 sm:$0xff]   ;;  %v1059_v61 = vld [vmem:[#allocation4 + $0x138] ss:$12 sps:$4 sm:$0xff]  }
  0x28   :  { %390 = vmatprep.subr.bf16.mxu0 %v1027_v33  ;;  %v1060_v62 = vld [vmem:[#allocation4 + $0x154] ss:$12 sps:$4 sm:$0xff]   ;;  %v1062_v63 = vld [vmem:[#allocation4 + $0x150] ss:$12 sps:$4 sm:$0xff]   ;;  %v114_v1 = vld [vmem:[#allocation4 + $0x168] sm:$0xff] }
  0x29   :  { %933 = vmatpush3.bf16.msra.mxu1 %v994_v12  ;;  %v116_v2 = vld [vmem:[#allocation4 + $0x174] sm:$0xff]  ;;  %v1065_v5 = vld [vmem:[%s1261_s4] ss:$12 sps:$4 sm:$0xff]  }
  0x2a   :  { %934 = vmatprep.subr.bf16.mxu1 %v995_v13  ;;  %v1063_v3 = vld [vmem:[#allocation4 + $0x16c] ss:$12 sps:$4 sm:$0xff]   ;;  %v898_v4 = vcombine.low %v114_v1, %v116_v2  ;;  %v1067_v6 = vld [vmem:[%s1261_s4 + $0x4] ss:$12 sps:$4 sm:$0xff]  }
  0x2b   :  { %391 = vmatpush1.bf16.msra.mxu0 %v1029_v34  ;;  %v1068_v7 = vld [vmem:[%s1261_s4 + $0x8] ss:$12 sps:$4 sm:$0xff]  }
  0x2c   :  { %392 = vmatprep.subr.bf16.mxu0 %v1030_v35 }
  0x2d   :  { %935 = vmatpush3.bf16.msra.mxu1 %v996_v14 }
  0x2e   :  { %936 = vmatprep.subr.bf16.mxu1 %v997_v15 }
  0x2f   :  { %393 = vmatpush1.bf16.msra.mxu0 %v1032_v38 }
  0x30   :  { %394 = vmatprep.subr.bf16.mxu0 %v1033_v39 }
  0x31   :  { %937 = vmatpush3.bf16.msra.mxu1 %v998_v16  ;;  %v527_v16 = vld [vmem:[#allocation3] sm:$0xff] }
  0x32   :  { %944 = vmatprep.subr.bf16.mxu1 %v1002_v17 }
  0x33   :  { %395 = vmatpush1.bf16.msra.mxu0 %v1035_v42 }
  0x34   :  { %460 = vmatmul.mubr.bf16.vlgmr.msra.gmra.mrb[0].mxu1 %v1177_v18  ;;  %396 = vmatprep.subr.bf16.mxu0 %v1036_v43 }
  0x35   :  { %945 = vmatpush3.bf16.msra.mxu1 %v1003_v19  ;;  %657 = vmatprep.mubr.bf16.mxu1 %v999_v11 }
  0x36   :  { %946 = vmatprep.subr.bf16.mxu1 %v1004_v20  ;;  %v528_v20 = vld [vmem:[#allocation3 + $0x8] sm:$0xff] }
  0x37   :  { %397 = vmatpush1.bf16.msra.mxu0 %v1038_v46 }
  0x38   :  { %398 = vmatprep.subr.bf16.mxu0 %v1039_v48 }
  0x39   :  { %947 = vmatpush3.bf16.msra.mxu1 %v1005_v23 }
  0x3a   :  { %948 = vmatprep.subr.bf16.mxu1 %v1006_v25 }
  0x3b   :  { %399 = vmatpush1.bf16.msra.mxu0 %v1041_v49 }
  0x3c   :  { %400 = vmatprep.subr.bf16.mxu0 %v1042_v50 }
  0x3d   :  { %949 = vmatpush3.bf16.msra.mxu1 %v1007_v28 }
  0x3e   :  { %950 = vmatprep.subr.bf16.mxu1 %v1008_v29 }
  0x3f   :  { %401 = vmatpush1.bf16.msra.mxu0 %v1044_v51 }
  0x40   :  { %402 = vmatprep.subr.bf16.mxu0 %v1045_v52 }
  0x41   :  { %951 = vmatpush3.bf16.msra.mxu1 %v1009_v30 }
  0x42   :  { %952 = vmatprep.subr.bf16.mxu1 %v1010_v32  ;;  %v793_v32 = vlaneseq }
  0x43   :  { %403 = vmatpush1.bf16.msra.mxu0 %v1047_v53 }
  0x44   :  { %404 = vmatprep.subr.bf16.mxu0 %v1048_v54  ;;  %v794_v33 = vshrl.u32 %v793_v32, 7 }
  0x45   :  { %953 = vmatpush3.bf16.msra.mxu1 %v1011_v36  ;;  %v791_v36 = vld [vmem:[%s1259_s2] sm:$0x7]  ;;  %s837_s2 = sshll.u32 %s1123_s20, 4  ;;  %s838_s2 = int_to_ptr.vmem [resolvable:$true] %s837_s2 }
  0x46   :  { %954 = vmatprep.subr.bf16.mxu1 %v1012_v37  ;;  %v803_v34 = vsub.s32 2, %v794_v33  ;;  %v795_v35 = vsub.s32 0, %v794_v33  ;;  %v799_v37 = vsub.s32 1, %v794_v33  ;;  %s1091_s21 = scalar_lea.vmem %s838_s2, 768  ;;  %p1096_p9 = scmp.lt.s32.totalorder %s838_s2, %s838_s2 }
  0x47   :  { %405 = vmatpush1.bf16.msra.mxu0 %v1050_v55  ;;  %p1092_p8 = scmp.ne.s32.totalorder %s838_s2, %s1091_s21  ;;  %p1097_p10 = scmp.lt.s32.totalorder %s1091_s21, %s1091_s21 }
  0x48   :  { %406 = vmatprep.subr.bf16.mxu0 %v1051_v56  ;;  %v804_v38 = vrot.slane %v791_v36, %v803_v34  ;;  %v796_v39 = vrot.slane %v791_v36, %v795_v35 }
  0x49   :  { %955 = vmatpush3.bf16.msra.mxu1 %v1013_v40  ;;  %v800_v40 = vrot.slane %v791_v36, %v799_v37  ;;  %p1098_p11 = por %p1097_p10, %p1096_p9 }
  0x4a   :  { %956 = vmatprep.subr.bf16.mxu1 %v1014_v41 }
  0x4b   :  { %407 = vmatpush1.bf16.msra.mxu0 %v1053_v57  ;;  %p1099_p12 = pnand %p1098_p11, %p1092_p8 }
  0x4c   :  { %408 = vmatprep.subr.bf16.mxu0 %v1054_v58 }
  0x4d   :  { %957 = vmatpush3.bf16.msra.mxu1 %v1015_v44 }
  0x4e   :  { %958 = vmatprep.subr.bf16.mxu1 %v1016_v45 }
  0x4f   :  { %409 = vmatpush1.bf16.msra.mxu0 %v1056_v59 }
  0x50   :  { %410 = vmatprep.subr.bf16.mxu0 %v1057_v60 }
  0x51   :  { %959 = vmatpush3.bf16.msra.mxu1 %v1017_v47 }
  0x52   :  { %968 = vmatprep.subr.bf16.mxu1 %v1120_v0 }
  0x53   :  { %411 = vmatpush1.bf16.msra.mxu0 %v1059_v61 }
  0x54   :  { %658 = vmatmul.mubr.bf16.vlgmr.msra.gmra.mrb[4].mxu1 %v1177_v18  ;;  %412 = vmatprep.subr.bf16.mxu0 %v1060_v62 }
  0x55   :  { %969 = vmatpush3.bf16.msra.mxu1 %v1068_v7  ;;  %970 = vmatprep.mubr.msk.bf16.mxu1 %vm1122_vm1, %v1120_v0 }
  0x57   :  { %413 = vmatpush1.bf16.msra.mxu0 %v1062_v63 }
  0x58   :  { %414 = vmatprep.subr.bf16.mxu0 %v1063_v3 }
  0x5b   :  { %415 = vmatpush1.bf16.msra.mxu0 %v898_v4 }
  0x5c   :  { %701 = vmatprep.subr.bf16.mxu0 %v1067_v6 }
  0x5e   :  { %417 = vmatmul.mubr.bf16.vlgmr.msra.gmra.mrb[0].mxu0 %v1177_v18 }
  0x5f   :  { %702 = vmatpush1.bf16.msra.mxu0 %v1065_v5  ;;  %733 = vmatprep.mubr.bf16.mxu0 %v1121_v8 }
 0x107   :  { %v938_v9 = vpop.f32.mrb[0].mxu1 }
 0x108   :  { %v939_v10 = vpop.f32.mrb[1].mxu1 }
 0x109   :  { %v940_v11 = vadd.f32 %v939_v10, %v938_v9  ;;  %v941_v12 = vpop.f32.mrb[2].mxu1 }
 0x10a   :  { %v942_v13 = vpop.f32.mrb[3].mxu1 }
 0x10b   :  { %v943_v14 = vadd.f32 %v942_v13, %v941_v12  ;;  %v810_v43 = vadd.f32 %v940_v11, %v804_v38 }
 0x10d   :  { %v813_v49 = vadd.f32 %v943_v14, %v804_v38 }
 0x127   :  { %v960_v15 = vpop.f32.mrb[4].mxu1 }
 0x128   :  { %v961_v17 = vpop.f32.mrb[5].mxu1 }
 0x129   :  { %v962_v18 = vadd.f32 %v961_v17, %v960_v15  ;;  %v963_v19 = vpop.f32.mrb[6].mxu1 }
 0x12a   :  { %v964_v21 = vpop.f32.mrb[7].mxu1 }
 0x12b   :  { %v666_v22 = vadd.f32 %v962_v18, %v527_v16  ;;  %v965_v23 = vadd.f32 %v964_v21, %v963_v19 }
 0x12d   :  { %669 = vst.msk [vmem:[#allocation3] sm:$0xff] %vm487_vm0, %v666_v22  ;;  %v667_v24 = vadd.f32 %v965_v23, %v528_v20 }
 0x12f   :  { %670 = vst.msk [vmem:[#allocation3 + $0x8] sm:$0xff] %vm487_vm0, %v667_v24 }
 0x131   :  { %v418_v28 = vpop.f32.mrb[0].mxu0 }
 0x132   :  { %v420_v29 = vpop.f32.mrb[1].mxu0  ;;  %v808_v44 = vadd.f32 %v796_v39, %v418_v28 }
 0x133   :  { %v422_v30 = vpop.f32.mrb[2].mxu0  ;;  %v809_v50 = vadd.f32 %v800_v40, %v420_v29 }
 0x134   :  { %v674_v25 = vld [vmem:[#allocation3] sm:$0xff]  ;;  %v424_v31 = vpop.f32.mrb[3].mxu0  ;;  %v811_v51 = vadd.f32 %v796_v39, %v422_v30 }
 0x135   :  { %v812_v61 = vadd.f32 %v800_v40, %v424_v31 }
 0x136   :  { %v675_v26 = vld [vmem:[#allocation3 + $0x8] sm:$0xff] }
 0x137   :  { %v676_v27 = vpack.c.bf16 %v675_v26, %v674_v25 }
 0x139   :  { %920 = vmatmul.mubr.msk.bf16.vlgmr.msra.gmra.mrb[4].mxu0 %vm487_vm0, %v676_v27  ;;  %971 = vmatmul.mubr.msk.bf16.vlgmr.msra.gmra.mrb[8].mxu1 %vm487_vm0, %v676_v27 }
 0x20c   :  { %v735_v41 = vpop.f32.mrb[4].mxu0  ;;  %v778_v42 = vpop.f32.mrb[8].mxu1 }
 0x20d   :  { %v814_v45 = vmul.f32 2.0, %v735_v41  ;;  %v816_v46 = vmul.f32 2.0, %v778_v42  ;;  %v737_v47 = vpop.f32.mrb[5].mxu0  ;;  %v972_v48 = vpop.f32.mrb[9].mxu1 }
 0x20e   :  { %v815_v52 = vmul.f32 2.0, %v737_v47  ;;  %v739_v53 = vpop.f32.mrb[6].mxu0  ;;  %v781_v54 = vpop.f32.mrb[10].mxu1 }
 0x20f   :  { %v820_v55 = vadd.f32 %v814_v45, %v808_v44  ;;  %v822_v56 = vadd.f32 %v816_v46, %v810_v43  ;;  %v817_v57 = vmul.f32 2.0, %v739_v53  ;;  %v819_v58 = vmul.f32 2.0, %v781_v54  ;;  %v741_v59 = vpop.f32.mrb[7].mxu0  ;;  %v973_v60 = vpop.f32.mrb[11].mxu1 }
 0x210   :  { %v821_v62 = vadd.f32 %v815_v52, %v809_v50  ;;  %v818_v63 = vmul.f32 2.0, %v741_v59 }
 0x211   :  { %826 = vst [vmem:[#allocation7] sm:$0xff] %v820_v55  ;;  %828 = vst [vmem:[#allocation7 + $0x10] sm:$0xff] %v822_v56  ;;  %v823_v0 = vadd.f32 %v817_v57, %v811_v51  ;;  %v825_v1 = vadd.f32 %v819_v58, %v813_v49 }
 0x212   :  { %827 = vst [vmem:[#allocation7 + $0x8] sm:$0xff] %v821_v62  ;;  %v824_v2 = vadd.f32 %v818_v63, %v812_v61 }
 0x213   :  { %829 = vst [vmem:[#allocation7 + $0x18] sm:$0xff] %v823_v0  ;;  %831 = vst [vmem:[#allocation7 + $0x28] sm:$0xff] %v825_v1 }
 0x214   :  { %830 = vst [vmem:[#allocation7 + $0x20] sm:$0xff] %v824_v2 }
 0x215   :  { %1102 = shalt.err (!%p1099_p12)
}
 0x216   :  { %s1103_s24 = scalar_lea.hbm %s1262_s5, 768 }
 0x217   :  { %p1104_p13 = scmp.ne.s32.totalorder %s1262_s5, %s1103_s24  ;;  %p1107_p0 = scmp.lt.u32.totalorder %s1103_s24, %s1262_s5 }
 0x219   :  { %p1109_p1 = pnand %p1107_p0, %p1104_p13 }
 0x21b   :  { %1112 = shalt.err (!%p1109_p1)
}
 0x21c   :  { %s1124_s29 = smov 384   ;;  %s1125_s30 = smov 24  }
 0x21d   :  { %843 = dma.vmem_to_hbm [thread:$0]  %s838_s2, 768, %s1262_s5, [#allocation6], %s1124_s29, %s1124_s29, %s1125_s30  }
 0x21e   :  { %1115 = dma.done.wait [#allocation6], 768  }
 0x21f   :  { %1116 = vsyncadd [#allocation6], 4294966528 }
 0x220   :  { %847 = vsyncpa [#allocation5], 1 }
 0x221   :  { %848 = vsyncpa [#allocation6], 1 }

</bundles_post_ra>
